<compile_context>
chip_gen: v7x
topology: tpu7x:2x2x1
jax: 0.10.0
libtpu: 0.0.40
codegen_flags: <defaults>
</compile_context>

<pallas_src>
import jax
import jax.numpy as jnp
from jax import lax
from jax.experimental import pallas as pl
from jax.experimental.pallas import tpu as pltpu

NEG = 0.01                 # F.leaky_relu default negative_slope
CIN, H, W = 3, 8, 60
KW1 = 3
W1 = W - KW1 + 1           # 58 (conv_port output width)
CMID = 2                   # conv_port out channels
CMIX = 20                  # conv_mix out channels
K1 = CIN * W               # 180  im2col row width
N1 = 2 * CMID * W1         # 232  four conv_port channel blocks (2 heads x 2 ch)
N2 = 2 * CMIX              # 40   mix channels for both heads


def _leaky(x):
    return jnp.where(x >= 0, x, NEG * x)


# --------------------------------- kernel -----------------------------------
def td3_critic_kernel(x_ref, aa_ref, w1_ref, b1_ref, w2_ref, b2_ref,
                      wot_ref, sel_ref, waa_ref, bo_ref, out_ref):
    # x: (TB*8, 180) bf16 im2col rows; aa: (TB, 16) bf16 = [action | act]
    x = x_ref[...]

    # conv_port for both heads: one banded bf16 matmul, f32 acc -> (TB*8, 232)
    ys = _leaky(jnp.dot(x, w1_ref[...], preferred_element_type=jnp.float32)
                + b1_ref[...])

    # conv_mix for both heads: one block-diagonal bf16 matmul -> (TB*8, 40)
    z = _leaky(jnp.dot(ys.astype(jnp.bfloat16), w2_ref[...],
                       preferred_element_type=jnp.float32)
               + b2_ref[...])

    # conv_out: weight per (h, channel), reduce over h (sublanes) then over
    # each head's 20 channels via a (40, 2) selector matmul (all f32).
    tb = z.shape[0] // H
    z3 = z.reshape(tb, H, N2)                                   # (TB, 8, 40)
    hsum = jnp.sum(z3 * wot_ref[...][None, :, :], axis=1)       # (TB, 40)
    q_mix = jnp.dot(hsum, sel_ref[...],
                    preferred_element_type=jnp.float32)         # (TB, 2)

    # appended action/act channels of conv_out, both heads at once
    q_aa = jnp.dot(aa_ref[...], waa_ref[...],
                   preferred_element_type=jnp.float32)          # (TB, 2)

    out_ref[...] = q_mix + q_aa + bo_ref[...]                   # (TB, 2)


# ----------------------------- parameter setup -------------------------------
def init_params(key):
    """Deterministic synthetic weights with PyTorch Conv2d shapes."""
    def unif(k, shape, fan_in):
        bound = 1.0 / (fan_in ** 0.5)
        return jax.random.uniform(k, shape, jnp.float32, -bound, bound)

    def head(k0):
        ks = jax.random.split(k0, 6)
        Wp = unif(ks[0], (2, 3, 1, 3), 9)       # conv_port weight
        bp = unif(ks[1], (2,), 9)
        Wm = unif(ks[2], (20, 2, 1, 58), 116)   # conv_mix weight
        bm = unif(ks[3], (20,), 116)
        Wo = unif(ks[4], (1, 22, 8, 1), 176)    # conv_out weight
        bo = unif(ks[5], (1,), 176)
        return Wp, bp, Wm, bm, Wo, bo

    k1, k2 = jax.random.split(key)
    return head(k1), head(k2)


def pack_params(p1, p2):
    """Repack torch-layout weights of BOTH heads into fused matmul weights.

    Heavy matmul weights (w1, w2, waa) are returned in bf16 (MXU operands);
    biases / per-h conv_out weights / selector stay f32 (used post-accum).
    """
    Wp1, bp1, Wm1, bm1, Wo1, bo1 = p1
    Wp2, bp2, Wm2, bm2, Wo2, bo2 = p2

    # conv_port as a banded (Toeplitz) matmul weight: (180, 232).
    # Column block `blk` = (head, out-channel); rows are (ci, input-width).
    w_out = jnp.arange(W1)
    w1 = jnp.zeros((K1, N1), jnp.float32)
    for blk, (Wp, co) in enumerate([(Wp1, 0), (Wp1, 1), (Wp2, 0), (Wp2, 1)]):
        for ci in range(CIN):
            for kw in range(KW1):
                w1 = w1.at[ci * W + w_out + kw, blk * W1 + w_out].set(
                    Wp[co, ci, 0, kw])
    b1 = jnp.repeat(jnp.stack([bp1[0], bp1[1], bp2[0], bp2[1]]), W1)[None, :]

    # conv_mix, both heads, block diagonal: (232, 40).
    w2 = jnp.zeros((N1, N2), jnp.float32)
    w2 = w2.at[0:W1,          0:CMIX].set(Wm1[:, 0, 0, :].T)
    w2 = w2.at[W1:2 * W1,     0:CMIX].set(Wm1[:, 1, 0, :].T)
    w2 = w2.at[2 * W1:3 * W1, CMIX:].set(Wm2[:, 0, 0, :].T)
    w2 = w2.at[3 * W1:4 * W1, CMIX:].set(Wm2[:, 1, 0, :].T)
    b2 = jnp.concatenate([bm1, bm2])[None, :]                     # (1, 40)

    # conv_out mix-channel weights per h, both heads: (8, 40)
    wot = jnp.concatenate([Wo1[0, :CMIX, :, 0].T,
                           Wo2[0, :CMIX, :, 0].T], axis=1)
    # selector summing each head's 20 columns: (40, 2)
    sel = jnp.zeros((N2, 2), jnp.float32)
    sel = sel.at[0:CMIX, 0].set(1.0)
    sel = sel.at[CMIX:, 1].set(1.0)
    # appended action/act channel weights, both heads: (16, 2)
    waa = jnp.stack(
        [jnp.concatenate([Wo1[0, CMIX, :, 0], Wo1[0, CMIX + 1, :, 0]]),
         jnp.concatenate([Wo2[0, CMIX, :, 0], Wo2[0, CMIX + 1, :, 0]])],
        axis=1)
    bo = jnp.stack([bo1[0], bo2[0]])[None, :]                     # (1, 2)
    return (w1.astype(jnp.bfloat16), b1,
            w2.astype(jnp.bfloat16), b2,
            wot, sel,
            waa.astype(jnp.bfloat16), bo)


# --------------------------- generation-aware sizing --------------------------
def _tpu_budget():
    """(max_batch_tile, vmem_limit_bytes) sized per TPU generation."""
    try:
        vmem_cap = pltpu.get_tpu_info().vmem_capacity_bytes
    except Exception:
        vmem_cap = 64 * 1024 * 1024                   # assume smallest (v7x)
    if vmem_cap >= 100 * 1024 * 1024:                 # v5e / v6e: 128 MiB VMEM
        return 2048, 112 * 1024 * 1024
    return 1024, 56 * 1024 * 1024                     # v7x: 64 MiB VMEM


# ------------------------------- pallas wrapper -------------------------------
def td3_critic_pallas(obs_port, obs_action, act, params1, params2,
                      *, batch_tile=1024):
    assert batch_tile % 8 == 0, "batch_tile must be a multiple of 8"

    port = obs_port.reshape(-1, CIN, H, W)
    action = obs_action.reshape(-1, H).astype(jnp.float32)
    act2 = act.reshape(-1, H).astype(jnp.float32)
    B = port.shape[0]

    # Layout work done once on the XLA/HBM side. Cast to bf16 FIRST so the
    # relayout pass only moves half the bytes:
    #   x[b*8+h, ci*60+w] = port[b, ci, h, w]
    x = jnp.transpose(port.astype(jnp.bfloat16),
                      (0, 2, 1, 3)).reshape(B * H, K1)            # (B*8, 180)
    aa = jnp.concatenate([action, act2], axis=1).astype(jnp.bfloat16)  # (B, 16)

    packed = pack_params(params1, params2)

    # Batch tile: multiple of 16 (bf16 sublane packing) and capped at
    # ceil(B/2) so the "parallel" batch grid has >= 2 steps whenever B > 16
    # (lets v7x's two TensorCores split the work); also capped per generation.
    max_tb, vmem_limit = _tpu_budget()
    r16 = lambda n: ((n + 15) // 16) * 16
    tb = max(16, min(r16(batch_tile), max_tb, r16((B + 1) // 2)))
    Bp = ((B + tb - 1) // tb) * tb
    if Bp != B:
        x = jnp.pad(x, ((0, (Bp - B) * H), (0, 0)))
        aa = jnp.pad(aa, ((0, Bp - B), (0, 0)))
    grid = (Bp // tb,)

    const2 = lambda i: (0, 0)                 # weights: resident across steps
    w_specs = [pl.BlockSpec(p.shape, const2) for p in packed]

    q = pl.pallas_call(
        td3_critic_kernel,
        out_shape=jax.ShapeDtypeStruct((Bp, 2), jnp.float32),
        grid=grid,
        in_specs=[pl.BlockSpec((tb * H, K1), lambda i: (i, 0)),
                  pl.BlockSpec((tb, 2 * H), lambda i: (i, 0))] + w_specs,
        out_specs=pl.BlockSpec((tb, 2), lambda i: (i, 0)),
        compiler_params=pltpu.CompilerParams(
            dimension_semantics=("parallel",),        # shard batch over TCs
            vmem_limit_bytes=vmem_limit),
    )(x, aa, *packed)

    q = q[:B]
    # torch .squeeze() on (B,1,1,1) -> (B,) for B > 1
    return q[:, 0], q[:, 1]


# ---------------------------- pure-JAX reference ------------------------------
def _conv_ref(x, w, b):
    y = lax.conv_general_dilated(x, w, (1, 1), 'VALID',
                                 dimension_numbers=('NCHW', 'OIHW', 'NCHW'),
                                 precision=lax.Precision.HIGHEST)
    return y + b[None, :, None, None]


def td3_critic_ref(obs_port, obs_action, act, params1, params2):
    port = obs_port.reshape(-1, CIN, H, W).astype(jnp.float32)
    action = obs_action.reshape(-1, 1, H, 1).astype(jnp.float32)
    act4 = act.reshape(-1, 1, H, 1).astype(jnp.float32)

    def head(p):
        Wp, bp, Wm, bm, Wo, bo = p
        y = _leaky(_conv_ref(port, Wp, bp))
        z = _leaky(_conv_ref(y, Wm, bm))
        cat = jnp.concatenate([z, action, act4], axis=1)
        q = _conv_ref(cat, Wo, bo)
        return q.reshape(-1)

    return head(params1), head(params2)


if __name__ == "__main__":
    key = jax.random.PRNGKey(0)
    kobs, kact_o, kact, kparam = jax.random.split(key, 4)
    B = 2
    obs_port = jax.random.normal(kobs, (B, CIN * H * W), jnp.float32)  # (2, 1440)
    obs_action = jax.random.normal(kact_o, (B, H), jnp.float32)        # (2, 8)
    act = jax.random.normal(kact, (B, H), jnp.float32)                 # (2, 8)
    params1, params2 = init_params(kparam)

    q1, q2 = td3_critic_pallas(obs_port, obs_action, act, params1, params2)
    jax.block_until_ready((q1, q2))

    r1, r2 = td3_critic_ref(obs_port, obs_action, act, params1, params2)
    # Kernel runs the MXU in bf16 (f32 accumulation); reference is f32 at
    # Precision.HIGHEST, so allow bf16-level quantization error.
    assert jnp.allclose(q1, r1, atol=3e-2, rtol=3e-2), (q1, r1)
    assert jnp.allclose(q2, r2, atol=3e-2, rtol=3e-2), (q2, r2)
    print("KERNEL_OK")
</pallas_src>

<mosaic_0001>
module attributes {stable_mosaic.version = 11 : i64} {
  func.func @td3_critic_kernel(%arg0: i32, %arg1: memref<128x180xbf16, #tpu.memory_space<vmem>>, %arg2: memref<16x16xbf16, #tpu.memory_space<vmem>>, %arg3: memref<180x232xbf16, #tpu.memory_space<vmem>>, %arg4: memref<1x232xf32, #tpu.memory_space<vmem>>, %arg5: memref<232x40xbf16, #tpu.memory_space<vmem>>, %arg6: memref<1x40xf32, #tpu.memory_space<vmem>>, %arg7: memref<8x40xf32, #tpu.memory_space<vmem>>, %arg8: memref<40x2xf32, #tpu.memory_space<vmem>>, %arg9: memref<16x2xbf16, #tpu.memory_space<vmem>>, %arg10: memref<1x2xf32, #tpu.memory_space<vmem>>, %arg11: memref<16x2xf32, #tpu.memory_space<vmem>>) attributes {dimension_semantics = [#tpu.dimension_semantics<parallel>], iteration_bounds = array<i64: 1>, scalar_prefetch = 0 : i64, scratch_operands = 0 : i64, tpu.core_type = #tpu.core_type<tc>, window_params = [{transform_indices = @transform_0, window_bounds = array<i64: 128, 180>}, {transform_indices = @transform_1, window_bounds = array<i64: 16, 16>}, {pipeline_mode = #tpu.pipeline_mode<synchronous>, transform_indices = @transform_2, window_bounds = array<i64: 180, 232>}, {pipeline_mode = #tpu.pipeline_mode<synchronous>, transform_indices = @transform_3, window_bounds = array<i64: 1, 232>}, {pipeline_mode = #tpu.pipeline_mode<synchronous>, transform_indices = @transform_4, window_bounds = array<i64: 232, 40>}, {pipeline_mode = #tpu.pipeline_mode<synchronous>, transform_indices = @transform_5, window_bounds = array<i64: 1, 40>}, {pipeline_mode = #tpu.pipeline_mode<synchronous>, transform_indices = @transform_6, window_bounds = array<i64: 8, 40>}, {pipeline_mode = #tpu.pipeline_mode<synchronous>, transform_indices = @transform_7, window_bounds = array<i64: 40, 2>}, {pipeline_mode = #tpu.pipeline_mode<synchronous>, transform_indices = @transform_8, window_bounds = array<i64: 16, 2>}, {pipeline_mode = #tpu.pipeline_mode<synchronous>, transform_indices = @transform_9, window_bounds = array<i64: 1, 2>}, {transform_indices = @transform_10, window_bounds = array<i64: 16, 2>}]} {
    %c0 = arith.constant 0 : index
    %c0_0 = arith.constant 0 : index
    %0 = vector.load %arg1[%c0, %c0_0] : memref<128x180xbf16, #tpu.memory_space<vmem>>, vector<128x180xbf16>
    %c0_1 = arith.constant 0 : index
    %c0_2 = arith.constant 0 : index
    %1 = vector.load %arg3[%c0_1, %c0_2] : memref<180x232xbf16, #tpu.memory_space<vmem>>, vector<180x232xbf16>
    %cst = arith.constant dense<0.000000e+00> : vector<128x232xf32>
    %2 = tpu.matmul %0, %1, %cst {dimension_numbers = #tpu.dot_dimension_numbers<[1], [0], [0], [1], [0, 0, 1, 1], [], []>} : vector<128x180xbf16>, vector<180x232xbf16>, vector<128x232xf32> -> vector<128x232xf32>
    %c0_3 = arith.constant 0 : index
    %c0_4 = arith.constant 0 : index
    %3 = vector.load %arg4[%c0_3, %c0_4] : memref<1x232xf32, #tpu.memory_space<vmem>>, vector<1x232xf32>
    %4 = vector.broadcast %3 : vector<1x232xf32> to vector<128x232xf32>
    %5 = arith.addf %2, %4 : vector<128x232xf32>
    %cst_5 = arith.constant 0.000000e+00 : f32
    %6 = vector.broadcast %cst_5 : f32 to vector<128x232xf32>
    %7 = arith.cmpf oge, %5, %6 : vector<128x232xf32>
    %cst_6 = arith.constant 0.00999999977 : f32
    %8 = vector.broadcast %cst_6 : f32 to vector<128x232xf32>
    %9 = arith.mulf %8, %5 : vector<128x232xf32>
    %10 = arith.select %7, %5, %9 : vector<128x232xi1>, vector<128x232xf32>
    %11 = arith.truncf %10 : vector<128x232xf32> to vector<128x232xbf16>
    %c0_7 = arith.constant 0 : index
    %c0_8 = arith.constant 0 : index
    %12 = vector.load %arg5[%c0_7, %c0_8] : memref<232x40xbf16, #tpu.memory_space<vmem>>, vector<232x40xbf16>
    %cst_9 = arith.constant dense<0.000000e+00> : vector<128x40xf32>
    %13 = tpu.matmul %11, %12, %cst_9 {dimension_numbers = #tpu.dot_dimension_numbers<[1], [0], [0], [1], [0, 0, 1, 1], [], []>} : vector<128x232xbf16>, vector<232x40xbf16>, vector<128x40xf32> -> vector<128x40xf32>
    %c0_10 = arith.constant 0 : index
    %c0_11 = arith.constant 0 : index
    %14 = vector.load %arg6[%c0_10, %c0_11] : memref<1x40xf32, #tpu.memory_space<vmem>>, vector<1x40xf32>
    %15 = vector.broadcast %14 : vector<1x40xf32> to vector<128x40xf32>
    %16 = arith.addf %13, %15 : vector<128x40xf32>
    %cst_12 = arith.constant 0.000000e+00 : f32
    %17 = vector.broadcast %cst_12 : f32 to vector<128x40xf32>
    %18 = arith.cmpf oge, %16, %17 : vector<128x40xf32>
    %cst_13 = arith.constant 0.00999999977 : f32
    %19 = vector.broadcast %cst_13 : f32 to vector<128x40xf32>
    %20 = arith.mulf %19, %16 : vector<128x40xf32>
    %21 = arith.select %18, %16, %20 : vector<128x40xi1>, vector<128x40xf32>
    %22 = vector.shape_cast %21 : vector<128x40xf32> to vector<16x8x40xf32>
    %c0_14 = arith.constant 0 : index
    %c0_15 = arith.constant 0 : index
    %23 = vector.load %arg7[%c0_14, %c0_15] : memref<8x40xf32, #tpu.memory_space<vmem>>, vector<8x40xf32>
    %24 = vector.shape_cast %23 : vector<8x40xf32> to vector<1x8x40xf32>
    %25 = vector.broadcast %24 : vector<1x8x40xf32> to vector<16x8x40xf32>
    %26 = arith.mulf %22, %25 : vector<16x8x40xf32>
    %cst_16 = arith.constant dense<0.000000e+00> : vector<16x40xf32>
    %27 = vector.multi_reduction <add>, %26, %cst_16 [1] : vector<16x8x40xf32> to vector<16x40xf32>
    %c0_17 = arith.constant 0 : index
    %c0_18 = arith.constant 0 : index
    %28 = vector.load %arg8[%c0_17, %c0_18] : memref<40x2xf32, #tpu.memory_space<vmem>>, vector<40x2xf32>
    %cst_19 = arith.constant dense<0.000000e+00> : vector<16x2xf32>
    %29 = tpu.matmul %27, %28, %cst_19 {dimension_numbers = #tpu.dot_dimension_numbers<[1], [0], [0], [1], [0, 0, 1, 1], [], []>} : vector<16x40xf32>, vector<40x2xf32>, vector<16x2xf32> -> vector<16x2xf32>
    %c0_20 = arith.constant 0 : index
    %c0_21 = arith.constant 0 : index
    %30 = vector.load %arg2[%c0_20, %c0_21] : memref<16x16xbf16, #tpu.memory_space<vmem>>, vector<16x16xbf16>
    %c0_22 = arith.constant 0 : index
    %c0_23 = arith.constant 0 : index
    %31 = vector.load %arg9[%c0_22, %c0_23] : memref<16x2xbf16, #tpu.memory_space<vmem>>, vector<16x2xbf16>
    %cst_24 = arith.constant dense<0.000000e+00> : vector<16x2xf32>
    %32 = tpu.matmul %30, %31, %cst_24 {dimension_numbers = #tpu.dot_dimension_numbers<[1], [0], [0], [1], [0, 0, 1, 1], [], []>} : vector<16x16xbf16>, vector<16x2xbf16>, vector<16x2xf32> -> vector<16x2xf32>
    %33 = arith.addf %29, %32 : vector<16x2xf32>
    %c0_25 = arith.constant 0 : index
    %c0_26 = arith.constant 0 : index
    %34 = vector.load %arg10[%c0_25, %c0_26] : memref<1x2xf32, #tpu.memory_space<vmem>>, vector<1x2xf32>
    %35 = vector.broadcast %34 : vector<1x2xf32> to vector<16x2xf32>
    %36 = arith.addf %33, %35 : vector<16x2xf32>
    %c0_27 = arith.constant 0 : index
    %c0_28 = arith.constant 0 : index
    %37 = vector.load %arg11[%c0_27, %c0_28] : memref<16x2xf32, #tpu.memory_space<vmem>>, vector<16x2xf32>
    tpu.vector_store %arg11[%c0_27, %c0_28], %36 {strides = array<i32>} : memref<16x2xf32, #tpu.memory_space<vmem>>, vector<16x2xf32>,
    return
  }
  func.func @transform_0(%arg0: i32) -> (i32, i32) {
    %c0_i32 = arith.constant 0 : i32
    %c0_i32_0 = arith.constant 0 : i32
    return %arg0, %c0_i32 : i32, i32
  }
  func.func @transform_1(%arg0: i32) -> (i32, i32) {
    %c0_i32 = arith.constant 0 : i32
    %c0_i32_0 = arith.constant 0 : i32
    return %arg0, %c0_i32 : i32, i32
  }
  func.func @transform_2(%arg0: i32) -> (i32, i32) {
    %c0_i32 = arith.constant 0 : i32
    %c0_i32_0 = arith.constant 0 : i32
    %c0_i32_1 = arith.constant 0 : i32
    return %c0_i32, %c0_i32_0 : i32, i32
  }
  func.func @transform_3(%arg0: i32) -> (i32, i32) {
    %c0_i32 = arith.constant 0 : i32
    %c0_i32_0 = arith.constant 0 : i32
    %c0_i32_1 = arith.constant 0 : i32
    return %c0_i32, %c0_i32_0 : i32, i32
  }
  func.func @transform_4(%arg0: i32) -> (i32, i32) {
    %c0_i32 = arith.constant 0 : i32
    %c0_i32_0 = arith.constant 0 : i32
    %c0_i32_1 = arith.constant 0 : i32
    return %c0_i32, %c0_i32_0 : i32, i32
  }
  func.func @transform_5(%arg0: i32) -> (i32, i32) {
    %c0_i32 = arith.constant 0 : i32
    %c0_i32_0 = arith.constant 0 : i32
    %c0_i32_1 = arith.constant 0 : i32
    return %c0_i32, %c0_i32_0 : i32, i32
  }
  func.func @transform_6(%arg0: i32) -> (i32, i32) {
    %c0_i32 = arith.constant 0 : i32
    %c0_i32_0 = arith.constant 0 : i32
    %c0_i32_1 = arith.constant 0 : i32
    return %c0_i32, %c0_i32_0 : i32, i32
  }
  func.func @transform_7(%arg0: i32) -> (i32, i32) {
    %c0_i32 = arith.constant 0 : i32
    %c0_i32_0 = arith.constant 0 : i32
    %c0_i32_1 = arith.constant 0 : i32
    return %c0_i32, %c0_i32_0 : i32, i32
  }
  func.func @transform_8(%arg0: i32) -> (i32, i32) {
    %c0_i32 = arith.constant 0 : i32
    %c0_i32_0 = arith.constant 0 : i32
    %c0_i32_1 = arith.constant 0 : i32
    return %c0_i32, %c0_i32_0 : i32, i32
  }
  func.func @transform_9(%arg0: i32) -> (i32, i32) {
    %c0_i32 = arith.constant 0 : i32
    %c0_i32_0 = arith.constant 0 : i32
    %c0_i32_1 = arith.constant 0 : i32
    return %c0_i32, %c0_i32_0 : i32, i32
  }
  func.func @transform_10(%arg0: i32) -> (i32, i32) {
    %c0_i32 = arith.constant 0 : i32
    %c0_i32_0 = arith.constant 0 : i32
    return %arg0, %c0_i32 : i32, i32
  }
}

</mosaic_0001>

<bundles_post_ra>
// kernel: tpu_custom_call.1
= control target key start
LH: loop header
LB: loop body
LE: loop exit
PB: predicated region body
PF: predicated region fallthrough
CT: control target
= control target key end

     0   :  { %v1349_v1 = vmov 0   ;;  %vm274_vm0 = vcmask 424960   ;;  %vm299_vm1 = vcmask 1041408   ;;  %vm679_vm2 = vcmask 1043456   ;;  %s1743_s2 = inlined_call_operand.vmem [shape: bf16[180,232], index: 2, kind: input, shape index: {}]   ;;  %s1744_s0 = inlined_call_operand.vmem [shape: bf16[128,180], index: 0, kind: input, shape index: {}]   ;;  %s1745_s4 = inlined_call_operand.vmem [shape: bf16[232,40], index: 4, kind: input, shape index: {}]   ;;  %s1746_s3 = inlined_call_operand.vmem [shape: f32[1,232], index: 3, kind: input, shape index: {}]   ;;  %s1747_s8 = inlined_call_operand.vmem [shape: bf16[16,2], index: 8, kind: input, shape index: {}]   ;;  %s1748_s1 = inlined_call_operand.vmem [shape: bf16[16,16], index: 1, kind: input, shape index: {}]   ;;  %s1749_s7 = inlined_call_operand.vmem [shape: f32[40,2], index: 7, kind: input, shape index: {}]   ;;  %s1750_s5 = inlined_call_operand.vmem [shape: f32[1,40], index: 5, kind: input, shape index: {}]   ;;  %s1751_s6 = inlined_call_operand.vmem [shape: f32[8,40], index: 6, kind: input, shape index: {}]   ;;  %s1752_s9 = inlined_call_operand.vmem [shape: f32[1,2], index: 9, kind: input, shape index: {}]   ;;  %s1753_s10 = inlined_call_operand.vmem [shape: f32[16,2], index: 10, kind: output, shape index: {}]  }
   0x1   :  { %v1273_v0 = vld [vmem:[%s1743_s2 + $0x4] ss:$8 sps:$4 sm:$0xff]   ;;  %683 = vmatprep.subr.bf16.mxu1 %v1349_v1  ;;  %v1275_v2 = vld [vmem:[%s1743_s2] ss:$8 sps:$4 sm:$0xff]   ;;  %v1276_v3 = vld [vmem:[%s1743_s2 + $0x14] ss:$8 sps:$4 sm:$0xff]   ;;  %v77_v59 = vlaneseq }
   0x2   :  { %306 = vmatprep.subr.bf16.mxu0 %v1273_v0  ;;  %v1278_v4 = vld [vmem:[%s1743_s2 + $0x10] ss:$8 sps:$4 sm:$0xff]   ;;  %v1279_v5 = vld [vmem:[%s1743_s2 + $0x24] ss:$8 sps:$4 sm:$0xff]   ;;  %v1281_v6 = vld [vmem:[%s1743_s2 + $0x20] ss:$8 sps:$4 sm:$0xff]  }
   0x3   :  { %307 = vmatpush1.bf16.msra.mxu0 %v1275_v2  ;;  %v1282_v7 = vld [vmem:[%s1743_s2 + $0x34] ss:$8 sps:$4 sm:$0xff]   ;;  %v1284_v8 = vld [vmem:[%s1743_s2 + $0x30] ss:$8 sps:$4 sm:$0xff]   ;;  %v1285_v9 = vld [vmem:[%s1743_s2 + $0x44] ss:$8 sps:$4 sm:$0xff]  }
   0x4   :  { %308 = vmatprep.subr.bf16.mxu0 %v1276_v3  ;;  %v1287_v10 = vld [vmem:[%s1743_s2 + $0x40] ss:$8 sps:$4 sm:$0xff]   ;;  %v1288_v11 = vld [vmem:[%s1743_s2 + $0x54] ss:$8 sps:$4 sm:$0xff]   ;;  %v1310_v12 = vld [vmem:[%s1744_s0 + $0x4] ss:$8 sps:$4 sm:$0xff]  }
   0x5   :  { %1196 = vmatprep.mubr.msk.bf16.mxu0 %vm274_vm0, %v1310_v12  ;;  %v1290_v13 = vld [vmem:[%s1743_s2 + $0x50] ss:$8 sps:$4 sm:$0xff]   ;;  %v1291_v14 = vld [vmem:[%s1743_s2 + $0x64] ss:$8 sps:$4 sm:$0xff]   ;;  %v1293_v15 = vld [vmem:[%s1743_s2 + $0x60] ss:$8 sps:$4 sm:$0xff]  }
   0x6   :  { %v1294_v16 = vld [vmem:[%s1743_s2 + $0x74] ss:$8 sps:$4 sm:$0xff]   ;;  %v1296_v17 = vld [vmem:[%s1743_s2 + $0x70] ss:$8 sps:$4 sm:$0xff]   ;;  %v1332_v18 = vld [vmem:[%s1745_s4] sm:$0xff]   ;;  %v78_v60 = vshrl.u32 %v77_v59, 7 }
   0x7   :  { %309 = vmatpush1.bf16.msra.mxu0 %v1278_v4  ;;  %v1297_v19 = vld [vmem:[%s1743_s2 + $0x84] ss:$8 sps:$4 sm:$0xff]   ;;  %684 = vmatpush1.bf16.msra.mxu1 %v1332_v18  ;;  %v1299_v21 = vld [vmem:[%s1743_s2 + $0x80] ss:$8 sps:$4 sm:$0xff]   ;;  %v1300_v22 = vld [vmem:[%s1743_s2 + $0x94] ss:$8 sps:$4 sm:$0xff]  }
   0x8   :  { %310 = vmatprep.subr.bf16.mxu0 %v1279_v5  ;;  %v1333_v20 = vld [vmem:[%s1745_s4 + $0x8] sm:$0xff]   ;;  %685 = vmatprep.subr.bf16.mxu1 %v1349_v1  ;;  %v1334_v23 = vld [vmem:[%s1745_s4 + $0x10] sm:$0xff]   ;;  %v1335_v26 = vld [vmem:[%s1745_s4 + $0x18] sm:$0xff]   ;;  %v79_v61 = vsub.s32 0, %v78_v60  ;;  %v83_v63 = vsub.s32 1, %v78_v60  ;;  %vm654_vm7 = vcmask 850944  }
   0x9   :  { %v1302_v24 = vld [vmem:[%s1743_s2 + $0x90] ss:$8 sps:$4 sm:$0xff]   ;;  %v1303_v25 = vld [vmem:[%s1743_s2 + $0xa4] ss:$8 sps:$4 sm:$0xff]   ;;  %v1305_v28 = vld [vmem:[%s1743_s2 + $0xa0] ss:$8 sps:$4 sm:$0xff]  }
   0xa   :  { %v74_v27 = vld [vmem:[%s1743_s2 + $0xb0] sm:$0x33]  ;;  %v1336_v31 = vld [vmem:[%s1745_s4 + $0x20] sm:$0xff]   ;;  %v1337_v33 = vld [vmem:[%s1745_s4 + $0x28] sm:$0xff]  }
   0xb   :  { %311 = vmatpush1.bf16.msra.mxu0 %v1281_v6  ;;  %686 = vmatpush1.bf16.msra.mxu1 %v1333_v20  ;;  %v1194_v29 = vcombine.high %v74_v27, %v74_v27  ;;  %v1193_v30 = vcombine.low %v74_v27, %v74_v27  ;;  %v1308_v34 = vld [vmem:[%s1744_s0] ss:$8 sps:$4 sm:$0xff]   ;;  %v1311_v35 = vld [vmem:[%s1744_s0 + $0x14] ss:$8 sps:$4 sm:$0xff]   ;;  %v1313_v38 = vld [vmem:[%s1744_s0 + $0x10] ss:$8 sps:$4 sm:$0xff]  }
   0xc   :  { %312 = vmatprep.subr.bf16.mxu0 %v1282_v7  ;;  %687 = vmatprep.subr.bf16.mxu1 %v1349_v1  ;;  %v1338_v36 = vld [vmem:[%s1745_s4 + $0x30] sm:$0xff]   ;;  %v1339_v37 = vld [vmem:[%s1745_s4 + $0x38] sm:$0xff]   ;;  %v1314_v39 = vld [vmem:[%s1744_s0 + $0x24] ss:$8 sps:$4 sm:$0xff]  }
   0xd   :  { %v301_v32 = vsel %vm299_vm1, %v1193_v30, 0  ;;  %v1340_v40 = vld [vmem:[%s1745_s4 + $0x40] sm:$0xff]   ;;  %v1341_v41 = vld [vmem:[%s1745_s4 + $0x48] sm:$0xff]   ;;  %v1317_v43 = vld [vmem:[%s1744_s0 + $0x34] ss:$8 sps:$4 sm:$0xff]  }
   0xe   :  { %v1316_v42 = vld [vmem:[%s1744_s0 + $0x20] ss:$8 sps:$4 sm:$0xff]   ;;  %v1342_v44 = vld [vmem:[%s1745_s4 + $0x50] sm:$0xff]   ;;  %v1343_v45 = vld [vmem:[%s1745_s4 + $0x58] sm:$0xff]  }
   0xf   :  { %313 = vmatpush1.bf16.msra.mxu0 %v1284_v8  ;;  %688 = vmatpush1.bf16.msra.mxu1 %v1334_v23  ;;  %v1319_v46 = vld [vmem:[%s1744_s0 + $0x30] ss:$8 sps:$4 sm:$0xff]   ;;  %v1320_v47 = vld [vmem:[%s1744_s0 + $0x44] ss:$8 sps:$4 sm:$0xff]   ;;  %v1322_v48 = vld [vmem:[%s1744_s0 + $0x40] ss:$8 sps:$4 sm:$0xff]  }
  0x10   :  { %314 = vmatprep.subr.bf16.mxu0 %v1285_v9  ;;  %689 = vmatprep.subr.bf16.mxu1 %v1349_v1  ;;  %v1323_v49 = vld [vmem:[%s1744_s0 + $0x54] ss:$8 sps:$4 sm:$0xff]   ;;  %v1325_v50 = vld [vmem:[%s1744_s0 + $0x50] ss:$8 sps:$4 sm:$0xff]   ;;  %v1326_v51 = vld [vmem:[%s1744_s0 + $0x64] ss:$8 sps:$4 sm:$0xff]  }
  0x11   :  { %v1328_v52 = vld [vmem:[%s1744_s0 + $0x60] ss:$8 sps:$4 sm:$0xff]   ;;  %v1329_v53 = vld [vmem:[%s1744_s0 + $0x74] ss:$8 sps:$4 sm:$0xff]   ;;  %v1331_v54 = vld [vmem:[%s1744_s0 + $0x70] ss:$8 sps:$4 sm:$0xff]  }
  0x12   :  { %v1344_v55 = vld [vmem:[%s1745_s4 + $0x60] sm:$0xff]   ;;  %v1345_v56 = vld [vmem:[%s1745_s4 + $0x68] sm:$0xff]   ;;  %v1346_v57 = vld [vmem:[%s1745_s4 + $0x70] ss:$0 sps:$4 sm:$0xff]  }
  0x13   :  { %315 = vmatpush1.bf16.msra.mxu0 %v1287_v10  ;;  %690 = vmatpush1.bf16.msra.mxu1 %v1335_v26  ;;  %v681_v58 = vsel %vm679_vm2, %v1346_v57, 0  ;;  %v75_v62 = vld [vmem:[%s1746_s3] sm:$0x3] }
  0x14   :  { %316 = vmatprep.subr.bf16.mxu0 %v1288_v11  ;;  %691 = vmatprep.subr.bf16.mxu1 %v1349_v1  ;;  %v1595_v0 = vrot.slane %v75_v62, %v79_v61  ;;  %v1597_v2 = vrot.slane %v75_v62, %v83_v63 }
  0x17   :  { %317 = vmatpush1.bf16.msra.mxu0 %v1290_v13  ;;  %692 = vmatpush1.bf16.msra.mxu1 %v1336_v31 }
  0x18   :  { %318 = vmatprep.subr.bf16.mxu0 %v1291_v14  ;;  %693 = vmatprep.subr.bf16.mxu1 %v1349_v1 }
  0x1b   :  { %319 = vmatpush1.bf16.msra.mxu0 %v1293_v15  ;;  %694 = vmatpush1.bf16.msra.mxu1 %v1337_v33 }
  0x1c   :  { %320 = vmatprep.subr.bf16.mxu0 %v1294_v16  ;;  %695 = vmatprep.subr.bf16.mxu1 %v1349_v1 }
  0x1f   :  { %321 = vmatpush1.bf16.msra.mxu0 %v1296_v17  ;;  %696 = vmatpush1.bf16.msra.mxu1 %v1338_v36 }
  0x20   :  { %322 = vmatprep.subr.bf16.mxu0 %v1297_v19  ;;  %697 = vmatprep.subr.bf16.mxu1 %v1349_v1 }
  0x23   :  { %323 = vmatpush1.bf16.msra.mxu0 %v1299_v21  ;;  %698 = vmatpush1.bf16.msra.mxu1 %v1339_v37 }
  0x24   :  { %324 = vmatprep.subr.bf16.mxu0 %v1300_v22  ;;  %699 = vmatprep.subr.bf16.mxu1 %v1349_v1 }
  0x27   :  { %325 = vmatpush1.bf16.msra.mxu0 %v1302_v24  ;;  %700 = vmatpush1.bf16.msra.mxu1 %v1340_v40 }
  0x28   :  { %326 = vmatprep.subr.bf16.mxu0 %v1303_v25  ;;  %701 = vmatprep.subr.bf16.mxu1 %v1349_v1 }
  0x2b   :  { %327 = vmatpush1.bf16.msra.mxu0 %v1305_v28  ;;  %702 = vmatpush1.bf16.msra.mxu1 %v1341_v41 }
  0x2c   :  { %1195 = vmatprep.subr.msk.bf16.mxu0 %vm299_vm1, %v1194_v29  ;;  %703 = vmatprep.subr.bf16.mxu1 %v1349_v1 }
  0x2f   :  { %329 = vmatpush1.bf16.msra.mxu0 %v301_v32  ;;  %704 = vmatpush1.bf16.msra.mxu1 %v1342_v44 }
  0x30   :  { %705 = vmatprep.subr.bf16.mxu1 %v1349_v1 }
  0x32   :  { %339 = vmatmul.mubr.bf16.vlgmr.msra.gmra.mrb[0].mxu0 %v1308_v34 }
  0x33   :  { %1197 = vmatprep.mubr.msk.bf16.mxu0 %vm274_vm0, %v1311_v35  ;;  %706 = vmatpush1.bf16.msra.mxu1 %v1343_v45 }
  0x34   :  { %707 = vmatprep.subr.bf16.mxu1 %v1349_v1 }
  0x37   :  { %708 = vmatpush1.bf16.msra.mxu1 %v1344_v55 }
  0x38   :  { %709 = vmatprep.subr.bf16.mxu1 %v1349_v1 }
  0x3a   :  { %349 = vmatmul.mubr.bf16.gmra.mrb[4].mxu0 %v1313_v38 }
  0x3b   :  { %1198 = vmatprep.mubr.msk.bf16.mxu0 %vm274_vm0, %v1314_v39  ;;  %710 = vmatpush1.bf16.msra.mxu1 %v1345_v56 }
  0x3c   :  { %711 = vmatprep.subr.bf16.mxu1 %v1349_v1 }
  0x3f   :  { %712 = vmatpush1.bf16.msra.mxu1 %v681_v58 }
  0x42   :  { %359 = vmatmul.mubr.bf16.gmra.mrb[8].mxu0 %v1316_v42 }
  0x43   :  { %1199 = vmatprep.mubr.msk.bf16.mxu0 %vm274_vm0, %v1317_v43 }
  0x4a   :  { %369 = vmatmul.mubr.bf16.gmra.mrb[12].mxu0 %v1319_v46 }
  0x4b   :  { %1200 = vmatprep.mubr.msk.bf16.mxu0 %vm274_vm0, %v1320_v47 }
  0x52   :  { %379 = vmatmul.mubr.bf16.gmra.mrb[16].mxu0 %v1322_v48 }
  0x53   :  { %1201 = vmatprep.mubr.msk.bf16.mxu0 %vm274_vm0, %v1323_v49 }
  0x5a   :  { %389 = vmatmul.mubr.bf16.gmra.mrb[20].mxu0 %v1325_v50 }
  0x5b   :  { %1202 = vmatprep.mubr.msk.bf16.mxu0 %vm274_vm0, %v1326_v51 }
  0x62   :  { %399 = vmatmul.mubr.bf16.gmra.mrb[24].mxu0 %v1328_v52 }
  0x63   :  { %1203 = vmatprep.mubr.msk.bf16.mxu0 %vm274_vm0, %v1329_v53 }
  0x6a   :  { %409 = vmatmul.mubr.bf16.gmra.mrb[28].mxu0 %v1331_v54 }
 0x105   :  { %v340_v1 = vpop.f32.mrb[0].mxu0 }
 0x106   :  { %v341_v3 = vadd.f32 %v340_v1, %v1595_v0  ;;  %v342_v4 = vpop.f32.mrb[1].mxu0 }
 0x107   :  { %v343_v5 = vadd.f32 %v342_v4, %v1597_v2  ;;  %v344_v6 = vpop.f32.mrb[2].mxu0 }
 0x108   :  { %v451_v7 = vmul.f32 0.01, %v341_v3  ;;  %v345_v8 = vadd.f32 %v344_v6, %v1595_v0  ;;  %v346_v9 = vpop.f32.mrb[3].mxu0  ;;  %vm419_vm3 = vcmp.ge.f32.partialorder %v341_v3, 0.0 }
 0x109   :  { %v452_v10 = vmul.f32 0.01, %v343_v5  ;;  %v347_v11 = vadd.f32 %v346_v9, %v1597_v2  ;;  %vm420_vm5 = vcmp.ge.f32.partialorder %v343_v5, 0.0 }
 0x10a   :  { %vm421_vm4 = vcmp.ge.f32.partialorder %v345_v8, 0.0  ;;  %v453_v12 = vmul.f32 0.01, %v345_v8  ;;  %v483_v14 = vsel %vm419_vm3, %v341_v3, %v451_v7 }
 0x10b   :  { %v454_v13 = vmul.f32 0.01, %v347_v11  ;;  %vm422_vm6 = vcmp.ge.f32.partialorder %v347_v11, 0.0  ;;  %v484_v17 = vsel %vm420_vm5, %v343_v5, %v452_v10 }
 0x10c   :  { %v485_v15 = vsel %vm421_vm4, %v345_v8, %v453_v12 }
 0x10d   :  { %v350_v16 = vpop.f32.mrb[4].mxu0  ;;  %v486_v18 = vsel %vm422_vm6, %v347_v11, %v454_v13  ;;  %v515_v19 = vpack.c.bf16 %v485_v15, %v483_v14 }
 0x10e   :  { %v351_v20 = vadd.f32 %v350_v16, %v1595_v0  ;;  %v352_v21 = vpop.f32.mrb[5].mxu0  ;;  %v516_v22 = vpack.c.bf16 %v486_v18, %v484_v17 }
 0x10f   :  { %v353_v23 = vadd.f32 %v352_v21, %v1597_v2  ;;  %v354_v24 = vpop.f32.mrb[6].mxu0 }
 0x110   :  { %v455_v25 = vmul.f32 0.01, %v351_v20  ;;  %v355_v26 = vadd.f32 %v354_v24, %v1595_v0  ;;  %v356_v27 = vpop.f32.mrb[7].mxu0  ;;  %1220 = vmatprep.mubr.msk.bf16.mxu1 %vm654_vm7, %v516_v22  ;;  %vm423_vm8 = vcmp.ge.f32.partialorder %v351_v20, 0.0 }
 0x111   :  { %v456_v28 = vmul.f32 0.01, %v353_v23  ;;  %v357_v29 = vadd.f32 %v356_v27, %v1597_v2  ;;  %716 = vmatmul.mubr.bf16.vlgmr.msra.gmra.mrb[0].mxu1 %v515_v19  ;;  %vm424_vm9 = vcmp.ge.f32.partialorder %v353_v23, 0.0 }
 0x112   :  { %vm425_vm10 = vcmp.ge.f32.partialorder %v355_v26, 0.0  ;;  %v457_v30 = vmul.f32 0.01, %v355_v26  ;;  %v487_v32 = vsel %vm423_vm8, %v351_v20, %v455_v25 }
 0x113   :  { %vm426_vm11 = vcmp.ge.f32.partialorder %v357_v29, 0.0  ;;  %v458_v31 = vmul.f32 0.01, %v357_v29  ;;  %v488_v34 = vsel %vm424_vm9, %v353_v23, %v456_v28 }
 0x114   :  { %v489_v33 = vsel %vm425_vm10, %v355_v26, %v457_v30 }
 0x115   :  { %v490_v35 = vsel %vm426_vm11, %v357_v29, %v458_v31  ;;  %v360_v36 = vpop.f32.mrb[8].mxu0  ;;  %v517_v37 = vpack.c.bf16 %v489_v33, %v487_v32 }
 0x116   :  { %v518_v38 = vpack.c.bf16 %v490_v35, %v488_v34  ;;  %v361_v39 = vadd.f32 %v360_v36, %v1595_v0  ;;  %v362_v40 = vpop.f32.mrb[9].mxu0 }
 0x117   :  { %v363_v41 = vadd.f32 %v362_v40, %v1597_v2  ;;  %v364_v42 = vpop.f32.mrb[10].mxu0 }
 0x118   :  { %v459_v43 = vmul.f32 0.01, %v361_v39  ;;  %v365_v44 = vadd.f32 %v364_v42, %v1595_v0  ;;  %v366_v45 = vpop.f32.mrb[11].mxu0  ;;  %1221 = vmatprep.mubr.msk.bf16.mxu1 %vm654_vm7, %v518_v38  ;;  %vm427_vm12 = vcmp.ge.f32.partialorder %v361_v39, 0.0 }
 0x119   :  { %v460_v46 = vmul.f32 0.01, %v363_v41  ;;  %v367_v47 = vadd.f32 %v366_v45, %v1597_v2  ;;  %724 = vmatmul.mubr.bf16.gmra.mrb[4].mxu1 %v517_v37  ;;  %vm428_vm13 = vcmp.ge.f32.partialorder %v363_v41, 0.0 }
 0x11a   :  { %vm429_vm14 = vcmp.ge.f32.partialorder %v365_v44, 0.0  ;;  %v461_v48 = vmul.f32 0.01, %v365_v44  ;;  %v491_v50 = vsel %vm427_vm12, %v361_v39, %v459_v43 }
 0x11b   :  { %vm430_vm15 = vcmp.ge.f32.partialorder %v367_v47, 0.0  ;;  %v462_v49 = vmul.f32 0.01, %v367_v47  ;;  %v492_v52 = vsel %vm428_vm13, %v363_v41, %v460_v46 }
 0x11c   :  { %v493_v51 = vsel %vm429_vm14, %v365_v44, %v461_v48 }
 0x11d   :  { %v494_v53 = vsel %vm430_vm15, %v367_v47, %v462_v49  ;;  %v370_v54 = vpop.f32.mrb[12].mxu0  ;;  %v519_v55 = vpack.c.bf16 %v493_v51, %v491_v50 }
 0x11e   :  { %v520_v56 = vpack.c.bf16 %v494_v53, %v492_v52  ;;  %v371_v57 = vadd.f32 %v370_v54, %v1595_v0  ;;  %v372_v58 = vpop.f32.mrb[13].mxu0 }
 0x11f   :  { %v373_v59 = vadd.f32 %v372_v58, %v1597_v2  ;;  %v374_v60 = vpop.f32.mrb[14].mxu0 }
 0x120   :  { %v463_v61 = vmul.f32 0.01, %v371_v57  ;;  %v375_v62 = vadd.f32 %v374_v60, %v1595_v0  ;;  %v376_v63 = vpop.f32.mrb[15].mxu0  ;;  %1222 = vmatprep.mubr.msk.bf16.mxu1 %vm654_vm7, %v520_v56  ;;  %vm431_vm0 = vcmp.ge.f32.partialorder %v371_v57, 0.0 }
 0x121   :  { %v464_v1 = vmul.f32 0.01, %v373_v59  ;;  %v377_v3 = vadd.f32 %v376_v63, %v1597_v2  ;;  %732 = vmatmul.mubr.bf16.gmra.mrb[8].mxu1 %v519_v55  ;;  %vm432_vm1 = vcmp.ge.f32.partialorder %v373_v59, 0.0 }
 0x122   :  { %vm433_vm2 = vcmp.ge.f32.partialorder %v375_v62, 0.0  ;;  %v465_v4 = vmul.f32 0.01, %v375_v62  ;;  %v495_v6 = vsel %vm431_vm0, %v371_v57, %v463_v61 }
 0x123   :  { %vm434_vm3 = vcmp.ge.f32.partialorder %v377_v3, 0.0  ;;  %v466_v5 = vmul.f32 0.01, %v377_v3  ;;  %v496_v8 = vsel %vm432_vm1, %v373_v59, %v464_v1 }
 0x124   :  { %v497_v7 = vsel %vm433_vm2, %v375_v62, %v465_v4 }
 0x125   :  { %v498_v9 = vsel %vm434_vm3, %v377_v3, %v466_v5  ;;  %v380_v10 = vpop.f32.mrb[16].mxu0  ;;  %v521_v11 = vpack.c.bf16 %v497_v7, %v495_v6 }
 0x126   :  { %v522_v12 = vpack.c.bf16 %v498_v9, %v496_v8  ;;  %v381_v13 = vadd.f32 %v380_v10, %v1595_v0  ;;  %v382_v14 = vpop.f32.mrb[17].mxu0 }
 0x127   :  { %v383_v15 = vadd.f32 %v382_v14, %v1597_v2  ;;  %v384_v16 = vpop.f32.mrb[18].mxu0 }
 0x128   :  { %v467_v17 = vmul.f32 0.01, %v381_v13  ;;  %v385_v18 = vadd.f32 %v384_v16, %v1595_v0  ;;  %v386_v19 = vpop.f32.mrb[19].mxu0  ;;  %1223 = vmatprep.mubr.msk.bf16.mxu1 %vm654_vm7, %v522_v12  ;;  %vm435_vm4 = vcmp.ge.f32.partialorder %v381_v13, 0.0 }
 0x129   :  { %v468_v20 = vmul.f32 0.01, %v383_v15  ;;  %v387_v21 = vadd.f32 %v386_v19, %v1597_v2  ;;  %740 = vmatmul.mubr.bf16.gmra.mrb[12].mxu1 %v521_v11  ;;  %vm436_vm5 = vcmp.ge.f32.partialorder %v383_v15, 0.0 }
 0x12a   :  { %vm437_vm6 = vcmp.ge.f32.partialorder %v385_v18, 0.0  ;;  %v469_v22 = vmul.f32 0.01, %v385_v18  ;;  %v499_v24 = vsel %vm435_vm4, %v381_v13, %v467_v17 }
 0x12b   :  { %vm438_vm8 = vcmp.ge.f32.partialorder %v387_v21, 0.0  ;;  %v470_v23 = vmul.f32 0.01, %v387_v21  ;;  %v500_v26 = vsel %vm436_vm5, %v383_v15, %v468_v20  ;;  %vm1351_vm5 = vmmov 0  }
 0x12c   :  { %v501_v25 = vsel %vm437_vm6, %v385_v18, %v469_v22  ;;  %v1348_v22 = vld [vmem:[%s1748_s1] sm:$0xff]   ;;  %vm978_vm6 = vcmask 130048  }
 0x12d   :  { %v502_v27 = vsel %vm438_vm8, %v387_v21, %v470_v23  ;;  %v390_v28 = vpop.f32.mrb[20].mxu0  ;;  %v523_v29 = vpack.c.bf16 %v501_v25, %v499_v24  ;;  %v958_v23 = vld [vmem:[%s1749_s7] sm:$0xff]  ;;  %v959_v24 = vld [vmem:[%s1749_s7 + $0x8] sm:$0xff]  ;;  %vm845_vm8 = vcmask 326656  }
 0x12e   :  { %v524_v30 = vpack.c.bf16 %v502_v27, %v500_v26  ;;  %v391_v31 = vadd.f32 %v390_v28, %v1595_v0  ;;  %v392_v32 = vpop.f32.mrb[21].mxu0  ;;  %v1262_v25 = vpack.c.bf16 %v959_v24, %v958_v23  ;;  %v960_v26 = vld [vmem:[%s1749_s7 + $0x10] sm:$0xff]  ;;  %v961_v27 = vld [vmem:[%s1749_s7 + $0x18] sm:$0xff] }
 0x12f   :  { %v393_v33 = vadd.f32 %v392_v32, %v1597_v2  ;;  %v394_v34 = vpop.f32.mrb[22].mxu0  ;;  %v1266_v28 = vpack.c.bf16 %v961_v27, %v960_v26 }
 0x130   :  { %v471_v35 = vmul.f32 0.01, %v391_v31  ;;  %v395_v36 = vadd.f32 %v394_v34, %v1595_v0  ;;  %v396_v37 = vpop.f32.mrb[23].mxu0  ;;  %1224 = vmatprep.mubr.msk.bf16.mxu1 %vm654_vm7, %v524_v30  ;;  %vm439_vm9 = vcmp.ge.f32.partialorder %v391_v31, 0.0  ;;  %v1663_v30 = vld [vmem:[%s1750_s5] ss:$0 sm:$0xff] }
 0x131   :  { %v472_v38 = vmul.f32 0.01, %v393_v33  ;;  %v397_v39 = vadd.f32 %v396_v37, %v1597_v2  ;;  %748 = vmatmul.mubr.bf16.gmra.mrb[16].mxu1 %v523_v29  ;;  %vm440_vm10 = vcmp.ge.f32.partialorder %v393_v33, 0.0  ;;  %v962_v29 = vld [vmem:[%s1749_s7 + $0x20] sm:$0xff] }
 0x132   :  { %vm441_vm11 = vcmp.ge.f32.partialorder %v395_v36, 0.0  ;;  %v473_v40 = vmul.f32 0.01, %v395_v36  ;;  %v503_v42 = vsel %vm439_vm9, %v391_v31, %v471_v35 }
 0x133   :  { %vm442_vm12 = vcmp.ge.f32.partialorder %v397_v39, 0.0  ;;  %v474_v41 = vmul.f32 0.01, %v397_v39  ;;  %v504_v44 = vsel %vm440_vm10, %v393_v33, %v472_v38 }
 0x134   :  { %v505_v43 = vsel %vm441_vm11, %v395_v36, %v473_v40  ;;  %v1669_v36 = vld [vmem:[%s1751_s6] sm:$0xff] }
 0x135   :  { %v506_v45 = vsel %vm442_vm12, %v397_v39, %v474_v41  ;;  %v400_v46 = vpop.f32.mrb[24].mxu0  ;;  %v525_v47 = vpack.c.bf16 %v505_v43, %v503_v42  ;;  %vm1039_vm12 = vcmask 1041409  }
 0x136   :  { %v526_v48 = vpack.c.bf16 %v506_v45, %v504_v44  ;;  %v401_v49 = vadd.f32 %v400_v46, %v1595_v0  ;;  %v402_v50 = vpop.f32.mrb[25].mxu0 }
 0x137   :  { %v403_v51 = vadd.f32 %v402_v50, %v1597_v2  ;;  %v404_v52 = vpop.f32.mrb[26].mxu0 }
 0x138   :  { %v475_v53 = vmul.f32 0.01, %v401_v49  ;;  %v405_v54 = vadd.f32 %v404_v52, %v1595_v0  ;;  %v406_v55 = vpop.f32.mrb[27].mxu0  ;;  %1225 = vmatprep.mubr.msk.bf16.mxu1 %vm654_vm7, %v526_v48  ;;  %vm443_vm13 = vcmp.ge.f32.partialorder %v401_v49, 0.0 }
 0x139   :  { %v476_v56 = vmul.f32 0.01, %v403_v51  ;;  %v407_v57 = vadd.f32 %v406_v55, %v1597_v2  ;;  %756 = vmatmul.mubr.bf16.gmra.mrb[20].mxu1 %v525_v47  ;;  %vm444_vm14 = vcmp.ge.f32.partialorder %v403_v51, 0.0 }
 0x13a   :  { %vm445_vm15 = vcmp.ge.f32.partialorder %v405_v54, 0.0  ;;  %v477_v58 = vmul.f32 0.01, %v405_v54  ;;  %v507_v60 = vsel %vm443_vm13, %v401_v49, %v475_v53 }
 0x13b   :  { %vm446_vm0 = vcmp.ge.f32.partialorder %v407_v57, 0.0  ;;  %v478_v59 = vmul.f32 0.01, %v407_v57  ;;  %v508_v62 = vsel %vm444_vm14, %v403_v51, %v476_v56 }
 0x13c   :  { %v509_v61 = vsel %vm445_vm15, %v405_v54, %v477_v58  ;;  %vm1041_vm15 = vcmask 1042434  }
 0x13d   :  { %v510_v63 = vsel %vm446_vm0, %v407_v57, %v478_v59  ;;  %v410_v1 = vpop.f32.mrb[28].mxu0  ;;  %v527_v3 = vpack.c.bf16 %v509_v61, %v507_v60 }
 0x13e   :  { %v528_v4 = vpack.c.bf16 %v510_v63, %v508_v62  ;;  %v411_v5 = vadd.f32 %v410_v1, %v1595_v0  ;;  %v412_v6 = vpop.f32.mrb[29].mxu0 }
 0x13f   :  { %v413_v7 = vadd.f32 %v412_v6, %v1597_v2  ;;  %v414_v8 = vpop.f32.mrb[30].mxu0 }
 0x140   :  { %v479_v9 = vmul.f32 0.01, %v411_v5  ;;  %v415_v10 = vadd.f32 %v414_v8, %v1595_v0  ;;  %v416_v11 = vpop.f32.mrb[31].mxu0  ;;  %1226 = vmatprep.mubr.msk.bf16.mxu1 %vm654_vm7, %v528_v4  ;;  %vm447_vm1 = vcmp.ge.f32.partialorder %v411_v5, 0.0  ;;  %v1350_v0 = vmov 0.0  }
 0x141   :  { %v480_v12 = vmul.f32 0.01, %v413_v7  ;;  %v417_v13 = vadd.f32 %v416_v11, %v1597_v2  ;;  %764 = vmatmul.mubr.bf16.gmra.mrb[24].mxu1 %v527_v3  ;;  %vm448_vm2 = vcmp.ge.f32.partialorder %v413_v7, 0.0  ;;  %1243 = vmatprep.subr.bf16.mxu0 %v1350_v0  ;;  %v1347_v2 = vld [vmem:[%s1747_s8] sm:$0xff]  }
 0x142   :  { %vm449_vm3 = vcmp.ge.f32.partialorder %v415_v10, 0.0  ;;  %v481_v14 = vmul.f32 0.01, %v415_v10  ;;  %v511_v16 = vsel %vm447_vm1, %v411_v5, %v479_v9  ;;  %1244 = vmatpush3.bf16.msra.mxu0 %v1347_v2  ;;  %1245 = vmatprep.mubr.msk.bf16.mxu0 %vm1351_vm5, %v1350_v0  ;;  %vm1043_vm1 = vcmask 1043459  }
 0x143   :  { %vm450_vm4 = vcmp.ge.f32.partialorder %v417_v13, 0.0  ;;  %v482_v15 = vmul.f32 0.01, %v417_v13  ;;  %v512_v18 = vsel %vm448_vm2, %v413_v7, %v480_v12  ;;  %1263 = vmatprep.subr.bf16.mxu0 %v1262_v25  ;;  %vm1047_vm5 = vcmask 1045509  }
 0x144   :  { %v513_v17 = vsel %vm449_vm3, %v415_v10, %v481_v14  ;;  %vm1045_vm3 = vcmask 1044484  }
 0x145   :  { %v514_v19 = vsel %vm450_vm4, %v417_v13, %v482_v15  ;;  %v529_v20 = vpack.c.bf16 %v513_v17, %v511_v16  ;;  %1246 = vmatmul.mubr.msk.bf16.vlgmr.msra.gmra.mrb[32].mxu0 %vm978_vm6, %v1348_v22 }
 0x146   :  { %v530_v21 = vpack.c.bf16 %v514_v19, %v512_v18  ;;  %1265 = vmatpush3.bf16.msra.mxu0 %v1262_v25 }
 0x147   :  { %1267 = vmatprep.subr.bf16.mxu0 %v1266_v28 }
 0x148   :  { %1227 = vmatprep.mubr.msk.bf16.mxu1 %vm654_vm7, %v530_v21 }
 0x149   :  { %772 = vmatmul.mubr.bf16.gmra.mrb[28].mxu1 %v529_v20 }
 0x14a   :  { %1269 = vmatpush3.bf16.msra.mxu0 %v1266_v28 }
 0x14b   :  { %1257 = vmatprep.subr.mxu0 %v962_v29 }
 0x14e   :  { %1258 = vmatpush3.msra.mxu0 %v962_v29 }
 0x1e4   :  { %v717_v31 = vpop.f32.mrb[0].mxu1 }
 0x1e5   :  { %v718_v32 = vadd.f32 %v1663_v30, %v717_v31  ;;  %v719_v33 = vpop.f32.mrb[1].mxu1 }
 0x1e6   :  { %v720_v34 = vpop.f32.mrb[2].mxu1 }
 0x1e7   :  { %vm780_vm7 = vcmp.ge.f32.partialorder %v718_v32, 0.0  ;;  %v796_v35 = vmul.f32 0.01, %v718_v32  ;;  %v721_v37 = vadd.f32 %v1663_v30, %v720_v34  ;;  %v722_v38 = vpop.f32.mrb[3].mxu1 }
 0x1e9   :  { %v812_v39 = vsel %vm780_vm7, %v718_v32, %v796_v35  ;;  %vm781_vm9 = vcmp.ge.f32.partialorder %v721_v37, 0.0  ;;  %v797_v40 = vmul.f32 0.01, %v721_v37  ;;  %vm1049_vm7 = vcmask 1046534  }
 0x1ea   :  { %v829_v41 = vmul.f32 %v1669_v36, %v812_v39 }
 0x1eb   :  { %v813_v42 = vsel %vm781_vm9, %v721_v37, %v797_v40 }
 0x1ec   :  { %v846_v43 = vsel %vm845_vm8, %v829_v41, 0.0  ;;  %v830_v44 = vmul.f32 %v1669_v36, %v813_v42  ;;  %v725_v45 = vpop.f32.mrb[4].mxu1 }
 0x1ed   :  { %v847_v46 = vrot.slane %v846_v43, 4  ;;  %v726_v47 = vadd.f32 %v1663_v30, %v725_v45  ;;  %v727_v48 = vpop.f32.mrb[5].mxu1 }
 0x1ee   :  { %v853_v49 = vsel %vm845_vm8, %v830_v44, 0.0  ;;  %v728_v50 = vpop.f32.mrb[6].mxu1 }
 0x1ef   :  { %v848_v51 = vadd.f32 %v847_v46, %v846_v43  ;;  %v854_v52 = vrot.slane %v853_v49, 4  ;;  %vm782_vm10 = vcmp.ge.f32.partialorder %v726_v47, 0.0  ;;  %v798_v53 = vmul.f32 0.01, %v726_v47  ;;  %v730_v54 = vpop.f32.mrb[7].mxu1 }
 0x1f0   :  { %v729_v55 = vadd.f32 %v1663_v30, %v728_v50 }
 0x1f1   :  { %v849_v56 = vrot.slane %v848_v51, 2  ;;  %v855_v57 = vadd.f32 %v854_v52, %v853_v49  ;;  %v814_v58 = vsel %vm782_vm10, %v726_v47, %v798_v53 }
 0x1f2   :  { %v831_v59 = vmul.f32 %v1669_v36, %v814_v58  ;;  %vm783_vm11 = vcmp.ge.f32.partialorder %v729_v55, 0.0  ;;  %v799_v60 = vmul.f32 0.01, %v729_v55 }
 0x1f3   :  { %v850_v61 = vadd.f32 %v849_v56, %v848_v51  ;;  %v856_v62 = vrot.slane %v855_v57, 2 }
 0x1f4   :  { %v860_v63 = vsel %vm845_vm8, %v831_v59, 0.0  ;;  %v815_v1 = vsel %vm783_vm11, %v729_v55, %v799_v60  ;;  %v733_v3 = vpop.f32.mrb[8].mxu1  ;;  %vm1051_vm11 = vcmask 1047559  }
 0x1f5   :  { %v851_v4 = vrot.slane %v850_v61, 1  ;;  %v857_v5 = vadd.f32 %v856_v62, %v855_v57  ;;  %v861_v6 = vrot.slane %v860_v63, 4  ;;  %v832_v7 = vmul.f32 %v1669_v36, %v815_v1  ;;  %v735_v8 = vpop.f32.mrb[9].mxu1 }
 0x1f6   :  { %v734_v9 = vadd.f32 %v1663_v30, %v733_v3  ;;  %v736_v10 = vpop.f32.mrb[10].mxu1 }
 0x1f7   :  { %v858_v11 = vrot.slane %v857_v5, 1  ;;  %v862_v12 = vadd.f32 %v861_v6, %v860_v63  ;;  %v867_v13 = vsel %vm845_vm8, %v832_v7, 0.0  ;;  %v738_v14 = vpop.f32.mrb[11].mxu1  ;;  %v737_v17 = vadd.f32 %v1663_v30, %v736_v10 }
 0x1f8   :  { %v868_v15 = vrot.slane %v867_v13, 4  ;;  %vm784_vm13 = vcmp.ge.f32.partialorder %v734_v9, 0.0  ;;  %v800_v16 = vmul.f32 0.01, %v734_v9  ;;  %v852_v18 = vadd.f32 %v851_v4, %v850_v61 }
 0x1f9   :  { %v859_v19 = vadd.f32 %v858_v11, %v857_v5  ;;  %v863_v20 = vrot.slane %v862_v12, 2  ;;  %vm785_vm14 = vcmp.ge.f32.partialorder %v737_v17, 0.0  ;;  %v801_v2 = vmul.f32 0.01, %v737_v17 }
 0x1fa   :  { %v869_v21 = vadd.f32 %v868_v15, %v867_v13  ;;  %v816_v0 = vsel %vm784_vm13, %v734_v9, %v800_v16 }
 0x1fb   :  { %v864_v22 = vadd.f32 %v863_v20, %v862_v12  ;;  %v833_v23 = vmul.f32 %v1669_v36, %v816_v0  ;;  %v1040_v24 = vsel %vm1039_vm12, %v859_v19, %v852_v18  ;;  %v817_v26 = vsel %vm785_vm14, %v737_v17, %v801_v2 }
 0x1fc   :  { %v870_v25 = vrot.slane %v869_v21, 2  ;;  %v741_v27 = vpop.f32.mrb[12].mxu1  ;;  %v834_v31 = vmul.f32 %v1669_v36, %v817_v26 }
 0x1fd   :  { %v865_v28 = vrot.slane %v864_v22, 1  ;;  %v874_v29 = vsel %vm845_vm8, %v833_v23, 0.0  ;;  %v742_v32 = vadd.f32 %v1663_v30, %v741_v27  ;;  %v743_v33 = vpop.f32.mrb[13].mxu1 }
 0x1fe   :  { %v871_v34 = vadd.f32 %v870_v25, %v869_v21  ;;  %v875_v35 = vrot.slane %v874_v29, 4  ;;  %v744_v37 = vpop.f32.mrb[14].mxu1  ;;  %v881_v39 = vsel %vm845_vm8, %v834_v31, 0.0 }
 0x1ff   :  { %v866_v38 = vadd.f32 %v865_v28, %v864_v22  ;;  %vm786_vm0 = vcmp.ge.f32.partialorder %v742_v32, 0.0  ;;  %v802_v40 = vmul.f32 0.01, %v742_v32  ;;  %v746_v41 = vpop.f32.mrb[15].mxu1  ;;  %v882_v44 = vrot.slane %v881_v39, 4 }
 0x200   :  { %v872_v42 = vrot.slane %v871_v34, 1  ;;  %v876_v43 = vadd.f32 %v875_v35, %v874_v29  ;;  %v745_v45 = vadd.f32 %v1663_v30, %v744_v37 }
 0x201   :  { %v818_v46 = vsel %vm786_vm0, %v742_v32, %v802_v40  ;;  %v1042_v47 = vsel %vm1041_vm15, %v866_v38, %v1040_v24  ;;  %v883_v50 = vadd.f32 %v882_v44, %v881_v39 }
 0x202   :  { %v873_v48 = vadd.f32 %v872_v42, %v871_v34  ;;  %v877_v49 = vrot.slane %v876_v43, 2  ;;  %v835_v51 = vmul.f32 %v1669_v36, %v818_v46  ;;  %vm787_vm2 = vcmp.ge.f32.partialorder %v745_v45, 0.0 }
 0x203   :  { %v803_v52 = vmul.f32 0.01, %v745_v45  ;;  %v884_v54 = vrot.slane %v883_v50, 2 }
 0x204   :  { %v878_v53 = vadd.f32 %v877_v49, %v876_v43  ;;  %v888_v55 = vsel %vm845_vm8, %v835_v51, 0.0  ;;  %v749_v56 = vpop.f32.mrb[16].mxu1  ;;  %v1044_v57 = vsel %vm1043_vm1, %v873_v48, %v1042_v47 }
 0x205   :  { %v889_v58 = vrot.slane %v888_v55, 4  ;;  %v819_v59 = vsel %vm787_vm2, %v745_v45, %v803_v52  ;;  %v750_v60 = vadd.f32 %v1663_v30, %v749_v56  ;;  %v751_v61 = vpop.f32.mrb[17].mxu1  ;;  %v885_v63 = vadd.f32 %v884_v54, %v883_v50 }
 0x206   :  { %v879_v62 = vrot.slane %v878_v53, 1  ;;  %v836_v1 = vmul.f32 %v1669_v36, %v819_v59  ;;  %v752_v3 = vpop.f32.mrb[18].mxu1 }
 0x207   :  { %v890_v4 = vadd.f32 %v889_v58, %v888_v55  ;;  %vm788_vm4 = vcmp.ge.f32.partialorder %v750_v60, 0.0  ;;  %v804_v5 = vmul.f32 0.01, %v750_v60  ;;  %v753_v6 = vadd.f32 %v1663_v30, %v752_v3  ;;  %v754_v7 = vpop.f32.mrb[19].mxu1 }
 0x208   :  { %v880_v8 = vadd.f32 %v879_v62, %v878_v53  ;;  %v886_v9 = vrot.slane %v885_v63, 1  ;;  %v895_v10 = vsel %vm845_vm8, %v836_v1, 0.0 }
 0x209   :  { %v891_v11 = vrot.slane %v890_v4, 2  ;;  %v896_v12 = vrot.slane %v895_v10, 4  ;;  %v820_v13 = vsel %vm788_vm4, %v750_v60, %v804_v5  ;;  %vm789_vm6 = vcmp.ge.f32.partialorder %v753_v6, 0.0 }
 0x20a   :  { %v837_v14 = vmul.f32 %v1669_v36, %v820_v13  ;;  %v805_v15 = vmul.f32 0.01, %v753_v6  ;;  %v887_v16 = vadd.f32 %v886_v9, %v885_v63  ;;  %v1046_v17 = vsel %vm1045_vm3, %v880_v8, %v1044_v57 }
 0x20b   :  { %v892_v18 = vadd.f32 %v891_v11, %v890_v4  ;;  %v897_v19 = vadd.f32 %v896_v12, %v895_v10 }
 0x20c   :  { %v902_v20 = vsel %vm845_vm8, %v837_v14, 0.0  ;;  %v821_v21 = vsel %vm789_vm6, %v753_v6, %v805_v15  ;;  %v757_v0 = vpop.f32.mrb[20].mxu1  ;;  %v1048_v2 = vsel %vm1047_vm5, %v887_v16, %v1046_v17 }
 0x20d   :  { %v898_v22 = vrot.slane %v897_v19, 2  ;;  %v903_v23 = vrot.slane %v902_v20, 4  ;;  %v838_v24 = vmul.f32 %v1669_v36, %v821_v21  ;;  %v758_v25 = vadd.f32 %v1663_v30, %v757_v0  ;;  %v759_v26 = vpop.f32.mrb[21].mxu1 }
 0x20e   :  { %v760_v27 = vpop.f32.mrb[22].mxu1  ;;  %v893_v28 = vrot.slane %v892_v18, 1 }
 0x20f   :  { %v904_v29 = vadd.f32 %v903_v23, %v902_v20  ;;  %v909_v31 = vsel %vm845_vm8, %v838_v24, 0.0  ;;  %vm790_vm9 = vcmp.ge.f32.partialorder %v758_v25, 0.0  ;;  %v806_v32 = vmul.f32 0.01, %v758_v25  ;;  %v762_v33 = vpop.f32.mrb[23].mxu1 }
 0x210   :  { %v910_v34 = vrot.slane %v909_v31, 4  ;;  %v761_v35 = vadd.f32 %v1663_v30, %v760_v27  ;;  %v894_v37 = vadd.f32 %v893_v28, %v892_v18  ;;  %v899_v38 = vadd.f32 %v898_v22, %v897_v19 }
 0x211   :  { %v905_v39 = vrot.slane %v904_v29, 2  ;;  %v822_v40 = vsel %vm790_vm9, %v758_v25, %v806_v32 }
 0x212   :  { %v911_v41 = vadd.f32 %v910_v34, %v909_v31  ;;  %v839_v42 = vmul.f32 %v1669_v36, %v822_v40  ;;  %vm791_vm10 = vcmp.ge.f32.partialorder %v761_v35, 0.0  ;;  %v807_v43 = vmul.f32 0.01, %v761_v35 }
 0x213   :  { %v906_v44 = vadd.f32 %v905_v39, %v904_v29  ;;  %v900_v45 = vrot.slane %v899_v38, 1  ;;  %v1050_v46 = vsel %vm1049_vm7, %v894_v37, %v1048_v2 }
 0x214   :  { %v912_v47 = vrot.slane %v911_v41, 2  ;;  %v916_v48 = vsel %vm845_vm8, %v839_v42, 0.0  ;;  %v823_v49 = vsel %vm791_vm10, %v761_v35, %v807_v43  ;;  %v765_v50 = vpop.f32.mrb[24].mxu1 }
 0x215   :  { %v917_v51 = vrot.slane %v916_v48, 4  ;;  %v840_v52 = vmul.f32 %v1669_v36, %v823_v49  ;;  %v766_v53 = vadd.f32 %v1663_v30, %v765_v50  ;;  %v767_v54 = vpop.f32.mrb[25].mxu1  ;;  %v907_v55 = vrot.slane %v906_v44, 1 }
 0x216   :  { %v913_v56 = vadd.f32 %v912_v47, %v911_v41  ;;  %v901_v57 = vadd.f32 %v900_v45, %v899_v38  ;;  %v768_v58 = vpop.f32.mrb[26].mxu1 }
 0x217   :  { %v918_v59 = vadd.f32 %v917_v51, %v916_v48  ;;  %v923_v60 = vsel %vm845_vm8, %v840_v52, 0.0  ;;  %vm792_vm13 = vcmp.ge.f32.partialorder %v766_v53, 0.0  ;;  %v770_v61 = vpop.f32.mrb[27].mxu1  ;;  %v808_v1 = vmul.f32 0.01, %v766_v53 }
 0x218   :  { %v914_v62 = vrot.slane %v913_v56, 1  ;;  %v924_v63 = vrot.slane %v923_v60, 4  ;;  %v1052_v3 = vsel %vm1051_vm11, %v901_v57, %v1050_v46  ;;  %v769_v5 = vadd.f32 %v1663_v30, %v768_v58 }
 0x219   :  { %v919_v4 = vrot.slane %v918_v59, 2  ;;  %1259 = vmatprep.mubr.msk.f32.mxu0 %vm845_vm8, %v1052_v3  ;;  %v908_v6 = vadd.f32 %v907_v55, %v906_v44  ;;  %v824_v9 = vsel %vm792_vm13, %v766_v53, %v808_v1 }
 0x21a   :  { %v915_v7 = vadd.f32 %v914_v62, %v913_v56  ;;  %v925_v8 = vadd.f32 %v924_v63, %v923_v60  ;;  %v841_v11 = vmul.f32 %v1669_v36, %v824_v9  ;;  %vm793_vm14 = vcmp.ge.f32.partialorder %v769_v5, 0.0  ;;  %v1233_v9 = vld [vmem:[%s1752_s9] ss:$0 sm:$0xff] }
 0x21b   :  { %v920_v10 = vadd.f32 %v919_v4, %v918_v59  ;;  %v809_v12 = vmul.f32 0.01, %v769_v5  ;;  %v1016_v4 = vpop.f32.mrb[32].mxu0 }
 0x21c   :  { %v1053_v13 = vsel %vm1039_vm12, %v915_v7, %v908_v6  ;;  %v926_v14 = vrot.slane %v925_v8, 2  ;;  %v773_v15 = vpop.f32.mrb[28].mxu1  ;;  %v930_v17 = vsel %vm845_vm8, %v841_v11, 0.0 }
 0x21d   :  { %v921_v16 = vrot.slane %v920_v10, 1  ;;  %v825_v18 = vsel %vm793_vm14, %v769_v5, %v809_v12  ;;  %v774_v19 = vadd.f32 %v1663_v30, %v773_v15  ;;  %v775_v20 = vpop.f32.mrb[29].mxu1  ;;  %v931_v0 = vrot.slane %v930_v17, 4  ;;  %v1247_v5 = vpop.f32.mrb[33].mxu0 }
 0x21e   :  { %v927_v21 = vadd.f32 %v926_v14, %v925_v8  ;;  %v842_v2 = vmul.f32 %v1669_v36, %v825_v18  ;;  %v776_v22 = vpop.f32.mrb[30].mxu1  ;;  %v1019_v6 = vpop.f32.mrb[34].mxu0 }
 0x21f   :  { %v922_v23 = vadd.f32 %v921_v16, %v920_v10  ;;  %vm794_vm0 = vcmp.ge.f32.partialorder %v774_v19, 0.0  ;;  %v810_v24 = vmul.f32 0.01, %v774_v19  ;;  %v777_v25 = vadd.f32 %v1663_v30, %v776_v22  ;;  %v778_v26 = vpop.f32.mrb[31].mxu1  ;;  %v1248_v7 = vpop.f32.mrb[35].mxu0 }
 0x220   :  { %v928_v27 = vrot.slane %v927_v21, 1  ;;  %v932_v28 = vadd.f32 %v931_v0, %v930_v17  ;;  %v937_v29 = vsel %vm845_vm8, %v842_v2, 0.0 }
 0x221   :  { %v938_v31 = vrot.slane %v937_v29, 4  ;;  %v826_v32 = vsel %vm794_vm0, %v774_v19, %v810_v24  ;;  %vm795_vm12 = vcmp.ge.f32.partialorder %v777_v25, 0.0  ;;  %v811_v33 = vmul.f32 0.01, %v777_v25 }
 0x222   :  { %v929_v34 = vadd.f32 %v928_v27, %v927_v21  ;;  %v933_v35 = vrot.slane %v932_v28, 2  ;;  %v843_v37 = vmul.f32 %v1669_v36, %v826_v32  ;;  %v1054_v38 = vsel %vm1041_vm15, %v922_v23, %v1053_v13 }
 0x223   :  { %v939_v39 = vadd.f32 %v938_v31, %v937_v29  ;;  %v827_v40 = vsel %vm795_vm12, %v777_v25, %v811_v33  ;;  %vm1148_vm15 = vcmask 15360  }
 0x224   :  { %v934_v41 = vadd.f32 %v933_v35, %v932_v28  ;;  %v944_v30 = vsel %vm845_vm8, %v843_v37, 0.0  ;;  %v844_v42 = vmul.f32 %v1669_v36, %v827_v40  ;;  %v1055_v43 = vsel %vm1043_vm1, %v929_v34, %v1054_v38 }
 0x225   :  { %v940_v44 = vrot.slane %v939_v39, 2  ;;  %v945_v45 = vrot.slane %v944_v30, 4 }
 0x226   :  { %v935_v46 = vrot.slane %v934_v41, 1  ;;  %v951_v47 = vsel %vm845_vm8, %v844_v42, 0.0 }
 0x227   :  { %v941_v48 = vadd.f32 %v940_v44, %v939_v39  ;;  %v946_v49 = vadd.f32 %v945_v45, %v944_v30  ;;  %v952_v50 = vrot.slane %v951_v47, 4 }
 0x228   :  { %v936_v51 = vadd.f32 %v935_v46, %v934_v41 }
 0x229   :  { %v942_v52 = vrot.slane %v941_v48, 1  ;;  %v947_v53 = vrot.slane %v946_v49, 2  ;;  %v953_v54 = vadd.f32 %v952_v50, %v951_v47 }
 0x22a   :  { %v1056_v55 = vsel %vm1045_vm3, %v936_v51, %v1055_v43 }
 0x22b   :  { %v943_v56 = vadd.f32 %v942_v52, %v941_v48  ;;  %v948_v57 = vadd.f32 %v947_v53, %v946_v49  ;;  %v954_v58 = vrot.slane %v953_v54, 2 }
 0x22d   :  { %v949_v36 = vrot.slane %v948_v57, 1  ;;  %v955_v59 = vadd.f32 %v954_v58, %v953_v54  ;;  %v1057_v60 = vsel %vm1047_vm5, %v943_v56, %v1056_v55 }
 0x22f   :  { %v950_v61 = vadd.f32 %v949_v36, %v948_v57  ;;  %v956_v62 = vrot.slane %v955_v59, 1 }
 0x231   :  { %v957_v63 = vadd.f32 %v956_v62, %v955_v59  ;;  %v1058_v1 = vsel %vm1049_vm7, %v950_v61, %v1057_v60 }
 0x233   :  { %v1059_v3 = vsel %vm1051_vm11, %v957_v63, %v1058_v1 }
 0x234   :  { %1260 = vmatmul.mubr.msk.f32.vlgmr.msra.gmra.mrb[36].mxu0 %vm845_vm8, %v1059_v3 }
 0x307   :  { %v1261_v8 = vpop.f32.mrb[36].mxu0 }
 0x308   :  { %v1136_v10 = vadd.f32 %v1261_v8, %v1019_v6  ;;  %v1130_v11 = vpop.f32.mrb[37].mxu0 }
 0x309   :  { %v1131_v12 = vadd.f32 %v1130_v11, %v1016_v4 }
 0x30a   :  { %v1147_v13 = vadd.f32 %v1233_v9, %v1136_v10 }
 0x30b   :  { %v1146_v14 = vadd.f32 %v1233_v9, %v1131_v12 }
 0x30c   :  { %1150 = vst.msk [vmem:[%s1753_s10 + $0x8] sm:$0xff] %vm1148_vm15, %v1147_v13 }
 0x30d   :  { %1149 = vst.msk [vmem:[%s1753_s10] sm:$0xff] %vm1148_vm15, %v1146_v14 }

</bundles_post_ra>
